<compile_context>
chip_gen: v7x
topology: tpu7x:2x2x1
jax: 0.10.0
libtpu: 0.0.40
codegen_flags: <defaults>
</compile_context>

<pallas_src>
import jax
import jax.numpy as jnp
from jax.experimental import pallas as pl
from jax.experimental.pallas import tpu as pltpu

# ---- L0GateLayer2d hyperparameters (fix_temp=True path) ----
LOC_MEAN = 1.0
LOC_SD = 0.01
BETA = 2.0 / 3.0      # temp
GAMMA = -0.1
ZETA = 1.1


def _round_up(x, m):
    return ((x + m - 1) // m) * m


def _gate_kernel(mask_ref, x_ref, o_ref):
    # mask_ref: (rt, 1) f32 ; x_ref, o_ref: (rt, lt)
    xv = x_ref[...].astype(jnp.float32)
    o_ref[...] = (xv * mask_ref[...]).astype(o_ref.dtype)


def _compute_mask(loc, u):
    """Concrete-distribution gate (stretched hard-sigmoid), per channel. O(C)."""
    ulogit = jnp.log(u) - jnp.log1p(-u)
    s = jax.nn.sigmoid((ulogit + loc) / BETA)
    s = s * (ZETA - GAMMA) + GAMMA
    return jnp.clip(s, 0.0, 1.0).astype(jnp.float32)


def l0_gate_2d_forward(x_nchw, loc, u, *, row_tile=256, lane_tile=512):
    """x_nchw: (N, C, H, W), loc: (C,) f32, u: (C,) uniform(0,1) f32."""
    N, C, H, W = x_nchw.shape
    NC, HW = N * C, H * W

    # Per-channel mask (tiny) -> per-row column vector for the (N*C, HW) layout.
    mask = _compute_mask(loc.astype(jnp.float32), u.astype(jnp.float32))   # (C,)
    mask_rows = jnp.tile(mask, N).reshape(NC, 1)                           # (N*C, 1)

    # Flatten to a lane/sublane-dense 2D slab.
    x2 = x_nchw.reshape(NC, HW)

    # Tile sizes: multiples of (8, 128), capped by the (padded) array extents.
    rt = min(row_tile, _round_up(NC, 8))
    lt = min(lane_tile, _round_up(HW, 128))
    rows_p = _round_up(NC, rt)
    cols_p = _round_up(HW, lt)

    if rows_p != NC or cols_p != HW:
        x2 = jnp.pad(x2, ((0, rows_p - NC), (0, cols_p - HW)))
        mask_rows = jnp.pad(mask_rows, ((0, rows_p - NC), (0, 0)))

    grid = (rows_p // rt, cols_p // lt)

    out = pl.pallas_call(
        _gate_kernel,
        out_shape=jax.ShapeDtypeStruct((rows_p, cols_p), x_nchw.dtype),
        grid_spec=pltpu.PrefetchScalarGridSpec(
            num_scalar_prefetch=0,
            grid=grid,
            in_specs=[
                pl.BlockSpec((rt, 1), lambda i, j: (i, 0)),    # per-row mask
                pl.BlockSpec((rt, lt), lambda i, j: (i, j)),   # x tile
            ],
            out_specs=pl.BlockSpec((rt, lt), lambda i, j: (i, j)),
        ),
        compiler_params=pltpu.CompilerParams(
            dimension_semantics=("parallel", "parallel")),
    )(mask_rows, x2)

    if rows_p != NC or cols_p != HW:
        out = out[:NC, :HW]
    return out.reshape(N, C, H, W)


def _reference_forward(x_nchw, loc, u):
    """Pure-JAX reference mirroring the PyTorch module."""
    s = jax.nn.sigmoid((jnp.log(u) - jnp.log(1.0 - u) + loc) / BETA)
    s = s * (ZETA - GAMMA) + GAMMA
    mask = jnp.clip(s, 0.0, 1.0)
    # x.permute(2,3,0,1) * mask ; permute back == per-channel scale
    return x_nchw * mask[None, :, None, None]


if __name__ == "__main__":
    key = jax.random.PRNGKey(0)
    k_x, k_loc, k_u, k_x2 = jax.random.split(key, 4)

    # Main small-shape test (matches module defaults).
    N, C, H, W = 2, 4, 16, 16
    x = jax.random.normal(k_x, (N, C, H, W), dtype=jnp.float32)

    # Deterministic parameter init: loc ~ Normal(loc_mean, loc_sd).
    loc = LOC_MEAN + LOC_SD * jax.random.normal(k_loc, (C,), dtype=jnp.float32)
    # The module's self.uniform.uniform_() noise, drawn deterministically here.
    u = jax.random.uniform(k_u, (C,), dtype=jnp.float32, minval=1e-6,
                           maxval=1.0 - 1e-6)

    out = jax.block_until_ready(l0_gate_2d_forward(x, loc, u))
    ref = _reference_forward(x, loc, u)
    assert out.shape == (N, C, H, W)
    assert jnp.allclose(out, ref, atol=1e-5, rtol=1e-5)

    # Second test with awkward spatial dims to exercise the padding path.
    N2, C2, H2, W2 = 2, 4, 17, 5
    x_b = jax.random.normal(k_x2, (N2, C2, H2, W2), dtype=jnp.float32)
    out_b = jax.block_until_ready(l0_gate_2d_forward(x_b, loc, u))
    ref_b = _reference_forward(x_b, loc, u)
    assert out_b.shape == (N2, C2, H2, W2)
    assert jnp.allclose(out_b, ref_b, atol=1e-5, rtol=1e-5)

    print("KERNEL_OK")
</pallas_src>

<mosaic_0001>
module attributes {stable_mosaic.version = 11 : i64} {
  func.func @_gate_kernel(%arg0: i32, %arg1: i32, %arg2: memref<8x1xf32, #tpu.memory_space<vmem>>, %arg3: memref<8x256xf32, #tpu.memory_space<vmem>>, %arg4: memref<8x256xf32, #tpu.memory_space<vmem>>) attributes {dimension_semantics = [#tpu.dimension_semantics<parallel>, #tpu.dimension_semantics<parallel>], iteration_bounds = array<i64: 1, 1>, scalar_prefetch = 0 : i64, scratch_operands = 0 : i64, tpu.core_type = #tpu.core_type<tc>, window_params = [{transform_indices = @transform_0, window_bounds = array<i64: 8, 1>}, {transform_indices = @transform_1, window_bounds = array<i64: 8, 256>}, {transform_indices = @transform_2, window_bounds = array<i64: 8, 256>}]} {
    %c0 = arith.constant 0 : index
    %c0_0 = arith.constant 0 : index
    %0 = vector.load %arg3[%c0, %c0_0] : memref<8x256xf32, #tpu.memory_space<vmem>>, vector<8x256xf32>
    %c0_1 = arith.constant 0 : index
    %c0_2 = arith.constant 0 : index
    %1 = vector.load %arg2[%c0_1, %c0_2] : memref<8x1xf32, #tpu.memory_space<vmem>>, vector<8x1xf32>
    %2 = vector.broadcast %1 : vector<8x1xf32> to vector<8x256xf32>
    %3 = arith.mulf %0, %2 : vector<8x256xf32>
    %c0_3 = arith.constant 0 : index
    %c0_4 = arith.constant 0 : index
    %4 = vector.load %arg4[%c0_3, %c0_4] : memref<8x256xf32, #tpu.memory_space<vmem>>, vector<8x256xf32>
    tpu.vector_store %arg4[%c0_3, %c0_4], %3 {strides = array<i32>} : memref<8x256xf32, #tpu.memory_space<vmem>>, vector<8x256xf32>,
    return
  }
  func.func @transform_0(%arg0: i32, %arg1: i32) -> (i32, i32) {
    %c0_i32 = arith.constant 0 : i32
    %c0_i32_0 = arith.constant 0 : i32
    return %arg0, %c0_i32 : i32, i32
  }
  func.func @transform_1(%arg0: i32, %arg1: i32) -> (i32, i32) {
    %c0_i32 = arith.constant 0 : i32
    return %arg0, %arg1 : i32, i32
  }
  func.func @transform_2(%arg0: i32, %arg1: i32) -> (i32, i32) {
    %c0_i32 = arith.constant 0 : i32
    return %arg0, %arg1 : i32, i32
  }
}

</mosaic_0001>

<bundles_post_ra>
// kernel: tpu_custom_call.1
= control target key start
LH: loop header
LB: loop body
LE: loop exit
PB: predicated region body
PF: predicated region fallthrough
CT: control target
= control target key end

     0   :  { %7 = vsyncpa [#allocation3], 0  ;;  %s148_s0 = inlined_call_operand.vmem [shape: f32[8,1], index: 0, kind: input, shape index: {}]   ;;  %s149_s1 = inlined_call_operand.hbm [shape: f32[8,256], index: 1, kind: input, shape index: {}]   ;;  %s150_s2 = inlined_call_operand.hbm [shape: f32[8,256], index: 2, kind: output, shape index: {}]  }
   0x1   :  { %8 = vsyncpa [#allocation4], 0  ;;  %s103_s9 = smov [#allocation2]   ;;  %s55_s13 = scalar_lea.hbm %s149_s1, 256 }
   0x2   :  { %s17_s10 = sshll.u32 %s103_s9, 4  ;;  %p56_p0 = scmp.ne.s32.totalorder %s149_s1, %s55_s13  ;;  %s18_s10 = int_to_ptr.vmem [resolvable:$true] %s17_s10 }
   0x3   :  { %p59_p1 = scmp.lt.u32.totalorder %s55_s13, %s149_s1 }
   0x5   :  { %p61_p2 = pnand %p59_p1, %p56_p0 }
   0x7   :  { %64 = shalt.err (!%p61_p2)
}
   0x8   :  { %s65_s18 = scalar_lea.vmem %s18_s10, 256  ;;  %p70_p4 = scmp.lt.s32.totalorder %s18_s10, %s18_s10 }
   0x9   :  { %p66_p3 = scmp.ne.s32.totalorder %s18_s10, %s65_s18  ;;  %p71_p5 = scmp.lt.s32.totalorder %s65_s18, %s65_s18 }
   0xb   :  { %p72_p6 = por %p71_p5, %p70_p4 }
   0xd   :  { %p73_p7 = pnand %p72_p6, %p66_p3 }
   0xf   :  { %76 = shalt.err (!%p73_p7)
}
  0x10   :  { %20 = dma.hbm_to_vmem [thread:$0]  %s149_s1, 256, %s18_s10, [#allocation3]  }
  0x11   :  { %99 = dma.done.wait [#allocation3], 256  }
  0x12   :  { %100 = vsyncadd [#allocation3], 4294967040  ;;  %v104_v0 = vmov 0   ;;  %v26_v1 = vld [vmem:[%s148_s0] sm:$0xff]  ;;  %v25_v3 = vld [vmem:[#allocation2 + $0x8] sm:$0xff]  ;;  %s105_s23 = smov [#allocation5]  }
  0x13   :  { %54 = vset.pattern.permute.xlu0 %v104_v0  ;;  %v24_v2 = vld [vmem:[#allocation2] sm:$0xff]  ;;  %s42_s24 = sshll.u32 %s105_s23, 4  ;;  %s43_s24 = int_to_ptr.vmem [resolvable:$true] %s42_s24 }
  0x14   :  { %29 = vperm.xlu0 %54, %v26_v1   ;;  %s77_s1 = scalar_lea.vmem %s43_s24, 256  ;;  %p82_p9 = scmp.lt.s32.totalorder %s43_s24, %s43_s24 }
  0x15   :  { %p78_p8 = scmp.ne.s32.totalorder %s43_s24, %s77_s1  ;;  %p83_p10 = scmp.lt.s32.totalorder %s77_s1, %s77_s1 }
  0x17   :  { %p84_p11 = por %p83_p10, %p82_p9 }
  0x19   :  { %p85_p12 = pnand %p84_p11, %p78_p8 }
  0x93   :  { %v30_v4 = vpop.permute.xlu0 %29 }
  0x94   :  { %v32_v5 = vmul.f32 %v30_v4, %v24_v2  ;;  %v33_v6 = vmul.f32 %v30_v4, %v25_v3 }
  0x96   :  { %34 = vst [vmem:[#allocation5] sm:$0xff] %v32_v5  ;;  %35 = vst [vmem:[#allocation5 + $0x8] sm:$0xff] %v33_v6 }
  0x97   :  { %88 = shalt.err (!%p85_p12)
}
  0x98   :  { %s89_s26 = scalar_lea.hbm %s150_s2, 256 }
  0x99   :  { %p90_p13 = scmp.ne.s32.totalorder %s150_s2, %s89_s26  ;;  %p93_p0 = scmp.lt.u32.totalorder %s89_s26, %s150_s2 }
  0x9b   :  { %p95_p1 = pnand %p93_p0, %p90_p13 }
  0x9d   :  { %98 = shalt.err (!%p95_p1)
}
  0x9e   :  { %45 = dma.vmem_to_hbm [thread:$0]  %s43_s24, 256, %s150_s2, [#allocation4]  }
  0x9f   :  { %101 = dma.done.wait [#allocation4], 256  }
  0xa0   :  { %102 = vsyncadd [#allocation4], 4294967040 }
  0xa1   :  { %49 = vsyncpa [#allocation3], 1 }
  0xa2   :  { %50 = vsyncpa [#allocation4], 1 }

</bundles_post_ra>
